<compile_context>
chip_gen: v6e
topology: v6e:2x2x1
jax: 0.10.0
libtpu: 0.0.40
codegen_flags: <defaults>
</compile_context>

<pallas_src>
import jax
import jax.numpy as jnp
from jax.experimental import pallas as pl
from jax.experimental.pallas import tpu as pltpu

LANE = 128     # vreg lane width
SUBLANE = 8    # f32 sublane count


def _round_up(n, m):
    return ((n + m - 1) // m) * m


def _default_num_tiles():
    """1 grid step on 1-TensorCore chips (v5e/v6e), 2 'parallel' steps on v7x."""
    try:
        kind = jax.devices()[0].device_kind.lower()
    except Exception:
        return 1
    return 2 if ("v7" in kind or "7x" in kind) else 1


def mlp_kernel(x_ref, w1_ref, b1_ref, w2_ref, b2_ref, w3_ref, b3_ref, o_ref):
    # x_ref : (TB, F)    bf16 (or f32), F un-padded
    # w1    : (F,  Hp)   bf16   b1: (1, Hp) f32
    # w2    : (Hp, Hp)   bf16   b2: (1, Hp) f32
    # w3    : (Hp, Op)   bf16   b3: (1, Op) f32
    # o_ref : (TB, Op)   bf16 (lane-dense, Op multiple of 128)
    x = x_ref[...]

    # Layer 1: bf16 operands on the MXU, f32 accumulation + f32 bias/ReLU on the VPU.
    h1 = jnp.dot(x, w1_ref[...], preferred_element_type=jnp.float32) + b1_ref[...]
    h1 = jnp.maximum(h1, 0.0).astype(w2_ref.dtype)

    # Layer 2.
    h2 = jnp.dot(h1, w2_ref[...], preferred_element_type=jnp.float32) + b2_ref[...]
    h2 = jnp.maximum(h2, 0.0).astype(w3_ref.dtype)

    # Output layer (no activation).
    out = jnp.dot(h2, w3_ref[...], preferred_element_type=jnp.float32) + b3_ref[...]
    o_ref[...] = out.astype(o_ref.dtype)


def prepare_params(params, *, use_bf16=True):
    """One-time padding / casting of the weights.  Call once, reuse per forward."""
    F, H = params["w1"].shape
    O = params["w3"].shape[1]
    Hp = _round_up(H, LANE)
    Op = _round_up(O, LANE)
    cdt = jnp.bfloat16 if use_bf16 else jnp.float32

    w1 = jnp.zeros((F, Hp), cdt).at[:, :H].set(params["w1"].astype(cdt))
    w2 = jnp.zeros((Hp, Hp), cdt).at[:H, :H].set(params["w2"].astype(cdt))
    w3 = jnp.zeros((Hp, Op), cdt).at[:H, :O].set(params["w3"].astype(cdt))
    b1 = jnp.zeros((1, Hp), jnp.float32).at[0, :H].set(params["b1"].astype(jnp.float32))
    b2 = jnp.zeros((1, Hp), jnp.float32).at[0, :H].set(params["b2"].astype(jnp.float32))
    b3 = jnp.zeros((1, Op), jnp.float32).at[0, :O].set(params["b3"].astype(jnp.float32))
    return {"w1": w1, "b1": b1, "w2": w2, "b2": b2, "w3": w3, "b3": b3,
            "F": F, "H": H, "O": O}


def net0_forward(x, prepared, *, num_tiles=None, out_dtype=jnp.bfloat16,
                 return_padded=False):
    """Pallas implementation of Net_0.forward.

    x: (B, n_feature); prepared: output of prepare_params().
    """
    w1, b1 = prepared["w1"], prepared["b1"]
    w2, b2 = prepared["w2"], prepared["b2"]
    w3, b3 = prepared["w3"], prepared["b3"]
    F, O = prepared["F"], prepared["O"]
    Hp = w1.shape[1]
    Op = w3.shape[1]
    cdt = w1.dtype

    B = x.shape[0]
    assert x.shape[1] == F, f"expected {F} input features, got {x.shape[1]}"

    if num_tiles is None:
        num_tiles = _default_num_tiles()
    num_tiles = max(1, int(num_tiles))

    # Batch padded only to tile granularity (rows sliced back at the end).
    Bp = _round_up(max(B, SUBLANE * num_tiles), SUBLANE * num_tiles)
    tile_b = Bp // num_tiles

    # x.float() in the reference, then MXU-input rounding: a single direct cast.
    x = x.astype(cdt)
    if Bp != B:
        x = jnp.pad(x, ((0, Bp - B), (0, 0)))

    flops = 2 * Bp * (F * Hp + Hp * Hp + Hp * Op)
    bytes_accessed = (
        Bp * F * jnp.dtype(cdt).itemsize
        + sum(int(a.size) * a.dtype.itemsize for a in (w1, b1, w2, b2, w3, b3))
        + Bp * Op * jnp.dtype(out_dtype).itemsize
    )

    out_padded = pl.pallas_call(
        mlp_kernel,
        out_shape=jax.ShapeDtypeStruct((Bp, Op), out_dtype),
        grid_spec=pl.GridSpec(
            grid=(num_tiles,),
            in_specs=[
                pl.BlockSpec((tile_b, F), lambda i: (i, 0)),      # x tile (streamed)
                # Weights/biases: constant index maps -> resident in VMEM.
                # (For large H add pipeline_mode=pl.Buffered(1) to these specs.)
                pl.BlockSpec(w1.shape, lambda i: (0, 0)),
                pl.BlockSpec(b1.shape, lambda i: (0, 0)),
                pl.BlockSpec(w2.shape, lambda i: (0, 0)),
                pl.BlockSpec(b2.shape, lambda i: (0, 0)),
                pl.BlockSpec(w3.shape, lambda i: (0, 0)),
                pl.BlockSpec(b3.shape, lambda i: (0, 0)),
            ],
            out_specs=pl.BlockSpec((tile_b, Op), lambda i: (i, 0)),  # lane-dense out
        ),
        compiler_params=pltpu.CompilerParams(
            dimension_semantics=("parallel",),
        ),
        cost_estimate=pl.CostEstimate(
            flops=flops, transcendentals=0, bytes_accessed=bytes_accessed),
    )(x, w1, b1, w2, b2, w3, b3)

    if return_padded:
        # NOTE: rows >= B contain bias-propagated garbage; columns >= O are zero-weight
        # columns (bias-only). Callers consuming the padded slab must mask accordingly.
        return out_padded
    return out_padded[:B, :O]


def init_params(key, n_feature, n_hidden, n_output):
    """Deterministic init mimicking PyTorch nn.Linear default (U[-1/sqrt(fan_in), +])."""
    ks = jax.random.split(key, 6)

    def lin(kw, kb, fan_in, fan_out):
        bound = 1.0 / jnp.sqrt(jnp.float32(fan_in))
        # stored directly as (in, out) so the kernel does x @ W  (== x @ W_torch.T)
        w = jax.random.uniform(kw, (fan_in, fan_out), jnp.float32, -bound, bound)
        b = jax.random.uniform(kb, (fan_out,), jnp.float32, -bound, bound)
        return w, b

    w1, b1 = lin(ks[0], ks[1], n_feature, n_hidden)
    w2, b2 = lin(ks[2], ks[3], n_hidden, n_hidden)
    w3, b3 = lin(ks[4], ks[5], n_hidden, n_output)
    return {"w1": w1, "b1": b1, "w2": w2, "b2": b2, "w3": w3, "b3": b3}


def net0_reference(x, params):
    """Pure-JAX f32 reference (matches the PyTorch module)."""
    x = x.astype(jnp.float32)
    h1 = jax.nn.relu(x @ params["w1"] + params["b1"])
    h2 = jax.nn.relu(h1 @ params["w2"] + params["b2"])
    return h2 @ params["w3"] + params["b3"]


if __name__ == "__main__":
    key = jax.random.PRNGKey(0)
    k_param, k_x = jax.random.split(key)

    n_feature, n_hidden, n_output = 16, 32, 8
    B = 512
    params = init_params(k_param, n_feature, n_hidden, n_output)
    prepared = prepare_params(params, use_bf16=True)     # one-time weight prep
    x = jax.random.normal(k_x, (B, n_feature), jnp.float32)

    fwd = jax.jit(lambda xx: net0_forward(xx, prepared))
    out = jax.block_until_ready(fwd(x))

    ref = net0_reference(x, params)
    assert out.shape == (B, n_output)
    out_f32 = out.astype(jnp.float32)
    # bf16 MXU operands / bf16 output with f32 accumulation: loosened tolerance.
    max_err = float(jnp.max(jnp.abs(out_f32 - ref)))
    assert jnp.allclose(out_f32, ref, atol=5e-2, rtol=5e-2), (
        f"mismatch vs reference (max abs err {max_err})")

    print("KERNEL_OK")
</pallas_src>

<mosaic_0001>
module attributes {stable_mosaic.version = 11 : i64} {
  func.func @mlp_kernel(%arg0: i32, %arg1: memref<512x16xbf16, #tpu.memory_space<vmem>>, %arg2: memref<16x128xbf16, #tpu.memory_space<vmem>>, %arg3: memref<1x128xf32, #tpu.memory_space<vmem>>, %arg4: memref<128x128xbf16, #tpu.memory_space<vmem>>, %arg5: memref<1x128xf32, #tpu.memory_space<vmem>>, %arg6: memref<128x128xbf16, #tpu.memory_space<vmem>>, %arg7: memref<1x128xf32, #tpu.memory_space<vmem>>, %arg8: memref<512x128xbf16, #tpu.memory_space<vmem>>) attributes {dimension_semantics = [#tpu.dimension_semantics<parallel>], iteration_bounds = array<i64: 1>, scalar_prefetch = 0 : i64, scratch_operands = 0 : i64, tpu.core_type = #tpu.core_type<tc>, window_params = [{transform_indices = @transform_0, window_bounds = array<i64: 512, 16>}, {pipeline_mode = #tpu.pipeline_mode<synchronous>, transform_indices = @transform_1, window_bounds = array<i64: 16, 128>}, {pipeline_mode = #tpu.pipeline_mode<synchronous>, transform_indices = @transform_2, window_bounds = array<i64: 1, 128>}, {pipeline_mode = #tpu.pipeline_mode<synchronous>, transform_indices = @transform_3, window_bounds = array<i64: 128, 128>}, {pipeline_mode = #tpu.pipeline_mode<synchronous>, transform_indices = @transform_4, window_bounds = array<i64: 1, 128>}, {pipeline_mode = #tpu.pipeline_mode<synchronous>, transform_indices = @transform_5, window_bounds = array<i64: 128, 128>}, {pipeline_mode = #tpu.pipeline_mode<synchronous>, transform_indices = @transform_6, window_bounds = array<i64: 1, 128>}, {transform_indices = @transform_7, window_bounds = array<i64: 512, 128>}]} {
    %c0 = arith.constant 0 : index
    %c0_0 = arith.constant 0 : index
    %0 = vector.load %arg1[%c0, %c0_0] : memref<512x16xbf16, #tpu.memory_space<vmem>>, vector<512x16xbf16>
    %c0_1 = arith.constant 0 : index
    %c0_2 = arith.constant 0 : index
    %1 = vector.load %arg2[%c0_1, %c0_2] : memref<16x128xbf16, #tpu.memory_space<vmem>>, vector<16x128xbf16>
    %cst = arith.constant dense<0.000000e+00> : vector<512x128xf32>
    %2 = tpu.matmul %0, %1, %cst {dimension_numbers = #tpu.dot_dimension_numbers<[1], [0], [0], [1], [0, 0, 1, 1], [], []>} : vector<512x16xbf16>, vector<16x128xbf16>, vector<512x128xf32> -> vector<512x128xf32>
    %c0_3 = arith.constant 0 : index
    %c0_4 = arith.constant 0 : index
    %3 = vector.load %arg3[%c0_3, %c0_4] : memref<1x128xf32, #tpu.memory_space<vmem>>, vector<1x128xf32>
    %4 = vector.broadcast %3 : vector<1x128xf32> to vector<512x128xf32>
    %5 = arith.addf %2, %4 : vector<512x128xf32>
    %cst_5 = arith.constant 0.000000e+00 : f32
    %6 = vector.broadcast %cst_5 : f32 to vector<512x128xf32>
    %7 = arith.maximumf %5, %6 : vector<512x128xf32>
    %8 = arith.truncf %7 : vector<512x128xf32> to vector<512x128xbf16>
    %c0_6 = arith.constant 0 : index
    %c0_7 = arith.constant 0 : index
    %9 = vector.load %arg4[%c0_6, %c0_7] : memref<128x128xbf16, #tpu.memory_space<vmem>>, vector<128x128xbf16>
    %cst_8 = arith.constant dense<0.000000e+00> : vector<512x128xf32>
    %10 = tpu.matmul %8, %9, %cst_8 {dimension_numbers = #tpu.dot_dimension_numbers<[1], [0], [0], [1], [0, 0, 1, 1], [], []>} : vector<512x128xbf16>, vector<128x128xbf16>, vector<512x128xf32> -> vector<512x128xf32>
    %c0_9 = arith.constant 0 : index
    %c0_10 = arith.constant 0 : index
    %11 = vector.load %arg5[%c0_9, %c0_10] : memref<1x128xf32, #tpu.memory_space<vmem>>, vector<1x128xf32>
    %12 = vector.broadcast %11 : vector<1x128xf32> to vector<512x128xf32>
    %13 = arith.addf %10, %12 : vector<512x128xf32>
    %cst_11 = arith.constant 0.000000e+00 : f32
    %14 = vector.broadcast %cst_11 : f32 to vector<512x128xf32>
    %15 = arith.maximumf %13, %14 : vector<512x128xf32>
    %16 = arith.truncf %15 : vector<512x128xf32> to vector<512x128xbf16>
    %c0_12 = arith.constant 0 : index
    %c0_13 = arith.constant 0 : index
    %17 = vector.load %arg6[%c0_12, %c0_13] : memref<128x128xbf16, #tpu.memory_space<vmem>>, vector<128x128xbf16>
    %cst_14 = arith.constant dense<0.000000e+00> : vector<512x128xf32>
    %18 = tpu.matmul %16, %17, %cst_14 {dimension_numbers = #tpu.dot_dimension_numbers<[1], [0], [0], [1], [0, 0, 1, 1], [], []>} : vector<512x128xbf16>, vector<128x128xbf16>, vector<512x128xf32> -> vector<512x128xf32>
    %c0_15 = arith.constant 0 : index
    %c0_16 = arith.constant 0 : index
    %19 = vector.load %arg7[%c0_15, %c0_16] : memref<1x128xf32, #tpu.memory_space<vmem>>, vector<1x128xf32>
    %20 = vector.broadcast %19 : vector<1x128xf32> to vector<512x128xf32>
    %21 = arith.addf %18, %20 : vector<512x128xf32>
    %22 = arith.truncf %21 : vector<512x128xf32> to vector<512x128xbf16>
    %c0_17 = arith.constant 0 : index
    %c0_18 = arith.constant 0 : index
    %23 = vector.load %arg8[%c0_17, %c0_18] : memref<512x128xbf16, #tpu.memory_space<vmem>>, vector<512x128xbf16>
    tpu.vector_store %arg8[%c0_17, %c0_18], %22 {strides = array<i32>} : memref<512x128xbf16, #tpu.memory_space<vmem>>, vector<512x128xbf16>,
    return
  }
  func.func @transform_0(%arg0: i32) -> (i32, i32) {
    %c0_i32 = arith.constant 0 : i32
    %c0_i32_0 = arith.constant 0 : i32
    return %arg0, %c0_i32 : i32, i32
  }
  func.func @transform_1(%arg0: i32) -> (i32, i32) {
    %c0_i32 = arith.constant 0 : i32
    %c0_i32_0 = arith.constant 0 : i32
    %c0_i32_1 = arith.constant 0 : i32
    return %c0_i32, %c0_i32_0 : i32, i32
  }
  func.func @transform_2(%arg0: i32) -> (i32, i32) {
    %c0_i32 = arith.constant 0 : i32
    %c0_i32_0 = arith.constant 0 : i32
    %c0_i32_1 = arith.constant 0 : i32
    return %c0_i32, %c0_i32_0 : i32, i32
  }
  func.func @transform_3(%arg0: i32) -> (i32, i32) {
    %c0_i32 = arith.constant 0 : i32
    %c0_i32_0 = arith.constant 0 : i32
    %c0_i32_1 = arith.constant 0 : i32
    return %c0_i32, %c0_i32_0 : i32, i32
  }
  func.func @transform_4(%arg0: i32) -> (i32, i32) {
    %c0_i32 = arith.constant 0 : i32
    %c0_i32_0 = arith.constant 0 : i32
    %c0_i32_1 = arith.constant 0 : i32
    return %c0_i32, %c0_i32_0 : i32, i32
  }
  func.func @transform_5(%arg0: i32) -> (i32, i32) {
    %c0_i32 = arith.constant 0 : i32
    %c0_i32_0 = arith.constant 0 : i32
    %c0_i32_1 = arith.constant 0 : i32
    return %c0_i32, %c0_i32_0 : i32, i32
  }
  func.func @transform_6(%arg0: i32) -> (i32, i32) {
    %c0_i32 = arith.constant 0 : i32
    %c0_i32_0 = arith.constant 0 : i32
    %c0_i32_1 = arith.constant 0 : i32
    return %c0_i32, %c0_i32_0 : i32, i32
  }
  func.func @transform_7(%arg0: i32) -> (i32, i32) {
    %c0_i32 = arith.constant 0 : i32
    %c0_i32_0 = arith.constant 0 : i32
    return %arg0, %c0_i32 : i32, i32
  }
}

</mosaic_0001>

<bundles_post_ra>
// kernel: _lambda_.1
= control target key start
LH: loop header
LB: loop body
LE: loop exit
PB: predicated region body
PF: predicated region fallthrough
CT: control target
= control target key end

     0   :  { %vm266_vm0 = vcmask 130048   ;;  %s3263_s1 = inlined_call_operand.vmem [shape: bf16[16,128], index: 1, kind: input, shape index: {}]   ;;  %s3264_s0 = inlined_call_operand.vmem [shape: bf16[512,16], index: 0, kind: input, shape index: {}]   ;;  %s3265_s3 = inlined_call_operand.vmem [shape: bf16[128,128], index: 3, kind: input, shape index: {}]   ;;  %s3266_s2 = inlined_call_operand.vmem [shape: f32[1,128], index: 2, kind: input, shape index: {}]   ;;  %s3267_s5 = inlined_call_operand.vmem [shape: bf16[128,128], index: 5, kind: input, shape index: {}]   ;;  %s3268_s4 = inlined_call_operand.vmem [shape: f32[1,128], index: 4, kind: input, shape index: {}]   ;;  %s3269_s6 = inlined_call_operand.vmem [shape: f32[1,128], index: 6, kind: input, shape index: {}]   ;;  %s3270_s7 = inlined_call_operand.vmem [shape: bf16[512,128], index: 7, kind: output, shape index: {}]  }
   0x1   :  { %v2632_v0 = vld [vmem:[%s3263_s1] sm:$0xff]   ;;  %v2634_v2 = vld [vmem:[%s3264_s0 + $0x8] sm:$0xff]   ;;  %v2635_v3 = vld [vmem:[%s3264_s0 + $0x10] sm:$0xff]  }
   0x2   :  { %v2633_v1 = vld [vmem:[%s3264_s0] sm:$0xff]   ;;  %2404 = vmatprep.subr.bf16.mxu0 %v2632_v0  ;;  %2630 = vmatprep.subr.bf16.mxu1 %v2632_v0  ;;  %v2636_v4 = vld [vmem:[%s3264_s0 + $0x18] sm:$0xff]   ;;  %v2638_v6 = vld [vmem:[%s3264_s0 + $0x28] sm:$0xff]  }
   0x3   :  { %2405 = vmatpush3.bf16.msra.mxu0 %v2632_v0  ;;  %2406 = vmatprep.mubr.msk.bf16.mxu0 %vm266_vm0, %v2633_v1  ;;  %v2637_v5 = vld [vmem:[%s3264_s0 + $0x20] sm:$0xff]   ;;  %v2639_v7 = vld [vmem:[%s3264_s0 + $0x30] sm:$0xff]   ;;  %v2650_v9 = vld [vmem:[%s3264_s0 + $0x88] sm:$0xff]  }
   0x4   :  { %2631 = vmatpush3.bf16.msra.mxu1 %v2632_v0  ;;  %v2649_v8 = vld [vmem:[%s3264_s0 + $0x80] sm:$0xff]   ;;  %v2651_v10 = vld [vmem:[%s3264_s0 + $0x90] sm:$0xff]   ;;  %v2652_v11 = vld [vmem:[%s3264_s0 + $0x98] sm:$0xff]  }
   0x5   :  { %2438 = vmatprep.mubr.msk.bf16.mxu1 %vm266_vm0, %v2649_v8  ;;  %v2653_v12 = vld [vmem:[%s3264_s0 + $0xa0] sm:$0xff]   ;;  %v2640_v13 = vld [vmem:[%s3264_s0 + $0x38] sm:$0xff]   ;;  %v2654_v15 = vld [vmem:[%s3264_s0 + $0xa8] sm:$0xff]  }
   0x6   :  { %2407 = vmatmul.mubr.msk.bf16.vlgmr.msra.gmra.mxu0 %vm266_vm0, %v2634_v2  ;;  %v2641_v14 = vld [vmem:[%s3264_s0 + $0x40] sm:$0xff]   ;;  %v2642_v16 = vld [vmem:[%s3264_s0 + $0x48] sm:$0xff]   ;;  %v2655_v17 = vld [vmem:[%s3264_s0 + $0xb0] sm:$0xff]  }
   0x7   :  { %2410 = vmatprep.mubr.msk.bf16.mxu0 %vm266_vm0, %v2635_v3  ;;  %2439 = vmatmul.mubr.msk.bf16.vlgmr.msra.gmra.mxu1 %vm266_vm0, %v2650_v9  ;;  %v2665_v18 = vld [vmem:[%s3265_s3 + $0x38] sm:$0xff]   ;;  %v2666_v19 = vld [vmem:[%s3265_s3 + $0x30] sm:$0xff]   ;;  %v2667_v21 = vld [vmem:[%s3265_s3 + $0x28] sm:$0xff]  }
   0x8   :  { %2442 = vmatprep.mubr.msk.bf16.mxu1 %vm266_vm0, %v2651_v10  ;;  %v2643_v20 = vld [vmem:[%s3264_s0 + $0x50] sm:$0xff]   ;;  %2470 = vmatprep.subr.bf16.mxu1 %v2665_v18  ;;  %v2656_v22 = vld [vmem:[%s3264_s0 + $0xb8] sm:$0xff]   ;;  %v2657_v23 = vld [vmem:[%s3264_s0 + $0xc0] sm:$0xff]  }
   0x9   :  { %2471 = vmatpush3.bf16.msra.mxu1 %v2665_v18  ;;  %v2644_v24 = vld [vmem:[%s3264_s0 + $0x58] sm:$0xff]   ;;  %v2668_v25 = vld [vmem:[%s3265_s3 + $0x20] sm:$0xff]   ;;  %v2658_v28 = vld [vmem:[%s3264_s0 + $0xc8] sm:$0xff]  }
   0xa   :  { %2472 = vmatprep.subr.bf16.mxu1 %v2666_v19  ;;  %v2645_v26 = vld [vmem:[%s3264_s0 + $0x60] sm:$0xff]   ;;  %v2669_v27 = vld [vmem:[%s3265_s3 + $0x18] sm:$0xff]   ;;  %v2659_v29 = vld [vmem:[%s3264_s0 + $0xd0] sm:$0xff]  }
   0xb   :  { %v2646_v30 = vld [vmem:[%s3264_s0 + $0x68] sm:$0xff]   ;;  %v2670_v31 = vld [vmem:[%s3265_s3 + $0x10] sm:$0xff]   ;;  %v2660_v34 = vld [vmem:[%s3264_s0 + $0xd8] sm:$0xff]  }
   0xc   :  { %v2647_v32 = vld [vmem:[%s3264_s0 + $0x70] sm:$0xff]   ;;  %v2671_v33 = vld [vmem:[%s3265_s3 + $0x8] sm:$0xff]   ;;  %v2661_v35 = vld [vmem:[%s3264_s0 + $0xe0] sm:$0xff]  }
   0xd   :  { %2473 = vmatpush3.bf16.msra.mxu1 %v2666_v19  ;;  %v2648_v36 = vld [vmem:[%s3264_s0 + $0x78] sm:$0xff]   ;;  %v2662_v37 = vld [vmem:[%s3264_s0 + $0xe8] sm:$0xff]   ;;  %v2663_v38 = vld [vmem:[%s3264_s0 + $0xf0] sm:$0xff]  }
   0xe   :  { %2411 = vmatmul.mubr.msk.bf16.gmra.mxu0 %vm266_vm0, %v2636_v4  ;;  %2474 = vmatprep.subr.bf16.mxu1 %v2667_v21  ;;  %v2664_v39 = vld [vmem:[%s3264_s0 + $0xf8] sm:$0xff]   ;;  %v2672_v40 = vld [vmem:[%s3265_s3] sm:$0xff]   ;;  %v2674_v53 = vld [vmem:[%s3267_s5 + $0x30] sm:$0xff]  }
   0xf   :  { %2414 = vmatprep.mubr.msk.bf16.mxu0 %vm266_vm0, %v2637_v5  ;;  %2443 = vmatmul.mubr.msk.bf16.gmra.mxu1 %vm266_vm0, %v2652_v11  ;;  %v2879_v43 = vld [vmem:[%s3266_s2] ss:$0 sm:$0xff]  ;;  %v2673_v50 = vld [vmem:[%s3267_s5 + $0x38] sm:$0xff]   ;;  %v2675_v59 = vld [vmem:[%s3267_s5 + $0x28] sm:$0xff]  }
  0x10   :  { %2446 = vmatprep.mubr.msk.bf16.mxu1 %vm266_vm0, %v2653_v12  ;;  %2550 = vmatprep.subr.bf16.mxu0 %v2673_v50  ;;  %v2676_v4 = vld [vmem:[%s3267_s5 + $0x20] sm:$0xff]  }
  0x11   :  { %2475 = vmatpush3.bf16.msra.mxu1 %v2667_v21  ;;  %2551 = vmatpush3.bf16.msra.mxu0 %v2673_v50 }
  0x12   :  { %2476 = vmatprep.subr.bf16.mxu1 %v2668_v25  ;;  %2552 = vmatprep.subr.bf16.mxu0 %v2674_v53 }
  0x15   :  { %2477 = vmatpush3.bf16.msra.mxu1 %v2668_v25  ;;  %2553 = vmatpush3.bf16.msra.mxu0 %v2674_v53 }
  0x16   :  { %2415 = vmatmul.mubr.msk.bf16.gmra.mxu0 %vm266_vm0, %v2638_v6  ;;  %2478 = vmatprep.subr.bf16.mxu1 %v2669_v27 }
  0x17   :  { %2418 = vmatprep.mubr.msk.bf16.mxu0 %vm266_vm0, %v2639_v7  ;;  %2447 = vmatmul.mubr.msk.bf16.gmra.mxu1 %vm266_vm0, %v2654_v15 }
  0x18   :  { %2450 = vmatprep.mubr.msk.bf16.mxu1 %vm266_vm0, %v2655_v17  ;;  %2554 = vmatprep.subr.bf16.mxu0 %v2675_v59 }
  0x19   :  { %2479 = vmatpush3.bf16.msra.mxu1 %v2669_v27  ;;  %2555 = vmatpush3.bf16.msra.mxu0 %v2675_v59 }
  0x1a   :  { %2480 = vmatprep.subr.bf16.mxu1 %v2670_v31  ;;  %2556 = vmatprep.subr.bf16.mxu0 %v2676_v4 }
  0x1d   :  { %2481 = vmatpush3.bf16.msra.mxu1 %v2670_v31  ;;  %2557 = vmatpush3.bf16.msra.mxu0 %v2676_v4 }
  0x1e   :  { %2419 = vmatmul.mubr.msk.bf16.gmra.mxu0 %vm266_vm0, %v2640_v13  ;;  %2482 = vmatprep.subr.bf16.mxu1 %v2671_v33 }
  0x1f   :  { %2422 = vmatprep.mubr.msk.bf16.mxu0 %vm266_vm0, %v2641_v14  ;;  %2451 = vmatmul.mubr.msk.bf16.gmra.mxu1 %vm266_vm0, %v2656_v22  ;;  %v2677_v14 = vld [vmem:[%s3267_s5 + $0x18] sm:$0xff]  }
  0x20   :  { %2454 = vmatprep.mubr.msk.bf16.mxu1 %vm266_vm0, %v2657_v23  ;;  %2558 = vmatprep.subr.bf16.mxu0 %v2677_v14 }
  0x21   :  { %2483 = vmatpush3.bf16.msra.mxu1 %v2671_v33  ;;  %2559 = vmatpush3.bf16.msra.mxu0 %v2677_v14 }
  0x22   :  { %2484 = vmatprep.subr.bf16.mxu1 %v2672_v40 }
  0x25   :  { %2485 = vmatpush3.bf16.msra.mxu1 %v2672_v40 }
  0x26   :  { %2423 = vmatmul.mubr.msk.bf16.gmra.mxu0 %vm266_vm0, %v2642_v16 }
  0x27   :  { %2426 = vmatprep.mubr.msk.bf16.mxu0 %vm266_vm0, %v2643_v20  ;;  %2455 = vmatmul.mubr.msk.bf16.gmra.mxu1 %vm266_vm0, %v2658_v28 }
  0x28   :  { %2458 = vmatprep.mubr.msk.bf16.mxu1 %vm266_vm0, %v2659_v29 }
  0x2e   :  { %2427 = vmatmul.mubr.msk.bf16.gmra.mxu0 %vm266_vm0, %v2644_v24  ;;  %v2678_v24 = vld [vmem:[%s3267_s5 + $0x10] sm:$0xff]  }
  0x2f   :  { %2430 = vmatprep.mubr.msk.bf16.mxu0 %vm266_vm0, %v2645_v26  ;;  %2459 = vmatmul.mubr.msk.bf16.gmra.mxu1 %vm266_vm0, %v2660_v34  ;;  %v2679_v34 = vld [vmem:[%s3267_s5 + $0x8] sm:$0xff]  }
  0x30   :  { %2462 = vmatprep.mubr.msk.bf16.mxu1 %vm266_vm0, %v2661_v35  ;;  %2560 = vmatprep.subr.bf16.mxu0 %v2678_v24 }
  0x31   :  { %2561 = vmatpush3.bf16.msra.mxu0 %v2678_v24 }
  0x32   :  { %2562 = vmatprep.subr.bf16.mxu0 %v2679_v34 }
  0x35   :  { %2563 = vmatpush3.bf16.msra.mxu0 %v2679_v34 }
  0x36   :  { %2431 = vmatmul.mubr.msk.bf16.gmra.mxu0 %vm266_vm0, %v2646_v30 }
  0x37   :  { %2434 = vmatprep.mubr.msk.bf16.mxu0 %vm266_vm0, %v2647_v32  ;;  %2463 = vmatmul.mubr.msk.bf16.gmra.mxu1 %vm266_vm0, %v2662_v37 }
  0x38   :  { %2466 = vmatprep.mubr.msk.bf16.mxu1 %vm266_vm0, %v2663_v38 }
  0x3e   :  { %2435 = vmatmul.mubr.msk.bf16.gmra.mxu0 %vm266_vm0, %v2648_v36 }
  0x3f   :  { %2467 = vmatmul.mubr.msk.bf16.gmra.mxu1 %vm266_vm0, %v2664_v39 }
  0xc6   :  { %v2408_v41 = vpop.f32.mrf.mxu0 }
  0xc7   :  { %v406_v47 = vadd.f32 %v2408_v41, %v2879_v43  ;;  %v2897_v2 = vpop.f32.mrf.mxu1 }
  0xc8   :  { %v397_v42 = vpop.f32.mrf.mxu0 }
  0xc9   :  { %v398_v45 = vadd.f32 %v2879_v43, %v397_v42  ;;  %v654_v56 = vmax.f32 %v406_v47, 0.0  ;;  %v2903_v7 = vpop.f32.mrf.mxu1 }
  0xca   :  { %v2409_v44 = vpop.f32.mrf.mxu0 }
  0xcb   :  { %v409_v46 = vadd.f32 %v2409_v44, %v2879_v43  ;;  %v652_v54 = vmax.f32 %v398_v45, 0.0  ;;  %v2905_v12 = vpop.f32.mrf.mxu1 }
  0xcc   :  { %v400_v48 = vpop.f32.mrf.mxu0 }
  0xcd   :  { %v401_v49 = vadd.f32 %v2879_v43, %v400_v48  ;;  %v655_v51 = vmax.f32 %v409_v46, 0.0  ;;  %v2910_v17 = vpop.f32.mrf.mxu1 }
  0xce   :  { %v2412_v52 = vpop.f32.mrf.mxu0 }
  0xcf   :  { %v653_v55 = vmax.f32 %v401_v49, 0.0  ;;  %v717_v60 = vpack.c.bf16 %v655_v51, %v654_v56  ;;  %v422_v0 = vadd.f32 %v2412_v52, %v2879_v43  ;;  %v2915_v22 = vpop.f32.mrf.mxu1 }
  0xd0   :  { %v413_v57 = vpop.f32.mrf.mxu0 }
  0xd1   :  { %v716_v58 = vpack.c.bf16 %v653_v55, %v652_v54  ;;  %v414_v62 = vadd.f32 %v2879_v43, %v413_v57  ;;  %v658_v10 = vmax.f32 %v422_v0, 0.0  ;;  %v2921_v27 = vpop.f32.mrf.mxu1 }
  0xd2   :  { %v2413_v61 = vpop.f32.mrf.mxu0 }
  0xd3   :  { %v425_v63 = vadd.f32 %v2413_v61, %v2879_v43  ;;  %2486 = vmatprep.mubr.bf16.mxu1 %v716_v58  ;;  %v656_v8 = vmax.f32 %v414_v62, 0.0  ;;  %v2923_v32 = vpop.f32.mrf.mxu1 }
  0xd4   :  { %v416_v1 = vpop.f32.mrf.mxu0  ;;  %2487 = vmatmul.mubr.bf16.vlgmr.msra.gmra.mxu1 %v717_v60 }
  0xd5   :  { %v417_v3 = vadd.f32 %v2879_v43, %v416_v1  ;;  %v659_v5 = vmax.f32 %v425_v63, 0.0  ;;  %v2928_v37 = vpop.f32.mrf.mxu1 }
  0xd6   :  { %v2416_v6 = vpop.f32.mrf.mxu0 }
  0xd7   :  { %v657_v9 = vmax.f32 %v417_v3, 0.0  ;;  %v719_v15 = vpack.c.bf16 %v659_v5, %v658_v10  ;;  %v438_v20 = vadd.f32 %v2416_v6, %v2879_v43  ;;  %v2933_v42 = vpop.f32.mrf.mxu1 }
  0xd8   :  { %v429_v11 = vpop.f32.mrf.mxu0 }
  0xd9   :  { %v718_v13 = vpack.c.bf16 %v657_v9, %v656_v8  ;;  %v430_v18 = vadd.f32 %v2879_v43, %v429_v11  ;;  %v662_v30 = vmax.f32 %v438_v20, 0.0  ;;  %v2936_v47 = vpop.f32.mrf.mxu1 }
  0xda   :  { %v2417_v16 = vpop.f32.mrf.mxu0 }
  0xdb   :  { %v441_v19 = vadd.f32 %v2417_v16, %v2879_v43  ;;  %2490 = vmatprep.mubr.bf16.mxu1 %v718_v13  ;;  %v660_v28 = vmax.f32 %v430_v18, 0.0  ;;  %v2938_v52 = vpop.f32.mrf.mxu1 }
  0xdc   :  { %v432_v21 = vpop.f32.mrf.mxu0  ;;  %2491 = vmatmul.mubr.bf16.gmra.mxu1 %v719_v15 }
  0xdd   :  { %v433_v23 = vadd.f32 %v2879_v43, %v432_v21  ;;  %v663_v25 = vmax.f32 %v441_v19, 0.0  ;;  %v2940_v56 = vpop.f32.mrf.mxu1 }
  0xde   :  { %v2420_v26 = vpop.f32.mrf.mxu0 }
  0xdf   :  { %v661_v29 = vmax.f32 %v433_v23, 0.0  ;;  %v721_v35 = vpack.c.bf16 %v663_v25, %v662_v30  ;;  %v454_v40 = vadd.f32 %v2420_v26, %v2879_v43  ;;  %v2945_v61 = vpop.f32.mrf.mxu1 }
  0xe0   :  { %v445_v31 = vpop.f32.mrf.mxu0 }
  0xe1   :  { %v720_v33 = vpack.c.bf16 %v661_v29, %v660_v28  ;;  %v446_v38 = vadd.f32 %v2879_v43, %v445_v31  ;;  %v666_v50 = vmax.f32 %v454_v40, 0.0  ;;  %v2948_v1 = vpop.f32.mrf.mxu1 }
  0xe2   :  { %v2421_v36 = vpop.f32.mrf.mxu0 }
  0xe3   :  { %v457_v39 = vadd.f32 %v2421_v36, %v2879_v43  ;;  %2494 = vmatprep.mubr.bf16.mxu1 %v720_v33  ;;  %v664_v48 = vmax.f32 %v446_v38, 0.0  ;;  %v2950_v11 = vpop.f32.mrf.mxu1 }
  0xe4   :  { %v448_v41 = vpop.f32.mrf.mxu0  ;;  %2495 = vmatmul.mubr.bf16.gmra.mxu1 %v721_v35 }
  0xe5   :  { %v449_v44 = vadd.f32 %v2879_v43, %v448_v41  ;;  %v667_v45 = vmax.f32 %v457_v39, 0.0  ;;  %v2956_v21 = vpop.f32.mrf.mxu1 }
  0xe6   :  { %v2424_v46 = vpop.f32.mrf.mxu0 }
  0xe7   :  { %v665_v49 = vmax.f32 %v449_v44, 0.0  ;;  %v723_v54 = vpack.c.bf16 %v667_v45, %v666_v50  ;;  %v470_v59 = vadd.f32 %v2424_v46, %v2879_v43  ;;  %v2958_v31 = vpop.f32.mrf.mxu1  ;;  %v526_v50 = vadd.f32 %v2879_v43, %v2903_v7 }
  0xe8   :  { %v461_v51 = vpop.f32.mrf.mxu0 }
  0xe9   :  { %v722_v53 = vpack.c.bf16 %v665_v49, %v664_v48  ;;  %v462_v57 = vadd.f32 %v2879_v43, %v461_v51  ;;  %v670_v5 = vmax.f32 %v470_v59, 0.0  ;;  %v2964_v41 = vpop.f32.mrf.mxu1  ;;  %v529_v51 = vadd.f32 %v2879_v43, %v2910_v17 }
  0xea   :  { %v2425_v55 = vpop.f32.mrf.mxu0 }
  0xeb   :  { %v473_v58 = vadd.f32 %v2425_v55, %v2879_v43  ;;  %2498 = vmatprep.mubr.bf16.mxu1 %v722_v53  ;;  %v668_v3 = vmax.f32 %v462_v57, 0.0  ;;  %v2970_v55 = vpop.f32.mrf.mxu1  ;;  %v685_v7 = vmax.f32 %v529_v51, 0.0  ;;  %v585_v51 = vadd.f32 %v2950_v11, %v2879_v43 }
  0xec   :  { %v464_v60 = vpop.f32.mrf.mxu0  ;;  %2499 = vmatmul.mubr.bf16.gmra.mxu1 %v723_v54  ;;  %v601_v11 = vadd.f32 %v2970_v55, %v2879_v43 }
  0xed   :  { %v465_v62 = vadd.f32 %v2879_v43, %v464_v60  ;;  %v671_v63 = vmax.f32 %v473_v58, 0.0 }
  0xee   :  { %v2428_v0 = vpop.f32.mrf.mxu0 }
  0xef   :  { %v669_v4 = vmax.f32 %v465_v62, 0.0  ;;  %v725_v9 = vpack.c.bf16 %v671_v63, %v670_v5  ;;  %v486_v15 = vadd.f32 %v2428_v0, %v2879_v43  ;;  %v684_v62 = vmax.f32 %v526_v50, 0.0 }
  0xf0   :  { %v477_v6 = vpop.f32.mrf.mxu0  ;;  %v582_v50 = vadd.f32 %v2945_v61, %v2879_v43  ;;  %v598_v61 = vadd.f32 %v2958_v31, %v2879_v43 }
  0xf1   :  { %v724_v8 = vpack.c.bf16 %v669_v4, %v668_v3  ;;  %v478_v13 = vadd.f32 %v2879_v43, %v477_v6  ;;  %v674_v25 = vmax.f32 %v486_v15, 0.0  ;;  %v592_v3 = vpop.f32.mrf.mxu1  ;;  %v537_v15 = vadd.f32 %v2905_v12, %v2879_v43 }
  0xf2   :  { %v2429_v10 = vpop.f32.mrf.mxu0  ;;  %v550_v12 = vadd.f32 %v2915_v22, %v2879_v43  ;;  %v566_v22 = vadd.f32 %v2933_v42, %v2879_v43  ;;  %v590_v42 = vadd.f32 %v2879_v43, %v2964_v41 }
  0xf3   :  { %v489_v14 = vadd.f32 %v2429_v10, %v2879_v43  ;;  %2502 = vmatprep.mubr.bf16.mxu1 %v724_v8  ;;  %v672_v23 = vmax.f32 %v478_v13, 0.0  ;;  %v732_v8 = vpack.c.bf16 %v685_v7, %v684_v62  ;;  %v545_v10 = vadd.f32 %v2879_v43, %v2928_v37 }
  0xf4   :  { %v480_v16 = vpop.f32.mrf.mxu0  ;;  %2503 = vmatmul.mubr.bf16.gmra.mxu1 %v725_v9  ;;  %v542_v9 = vadd.f32 %v2879_v43, %v2921_v27  ;;  %v534_v13 = vadd.f32 %v2897_v2, %v2879_v43  ;;  %v558_v37 = vadd.f32 %v2879_v43, %v2936_v47  ;;  %v561_v2 = vadd.f32 %v2879_v43, %v2940_v56 }
  0xf5   :  { %v481_v18 = vadd.f32 %v2879_v43, %v480_v16  ;;  %v675_v19 = vmax.f32 %v489_v14, 0.0  ;;  %v2984_v16 = vpop.f32.mrf.mxu1  ;;  %v574_v47 = vadd.f32 %v2879_v43, %v2948_v1  ;;  %v577_v56 = vadd.f32 %v2879_v43, %v2956_v21 }
  0xf6   :  { %v2432_v20 = vpop.f32.mrf.mxu0  ;;  %v694_v1 = vmax.f32 %v566_v22, 0.0  ;;  %v614_v31 = vadd.f32 %v2984_v16, %v2879_v43 }
  0xf7   :  { %v673_v24 = vmax.f32 %v481_v18, 0.0  ;;  %v727_v29 = vpack.c.bf16 %v675_v19, %v674_v25  ;;  %v502_v35 = vadd.f32 %v2432_v20, %v2879_v43  ;;  %v688_v18 = vmax.f32 %v542_v9, 0.0  ;;  %v605_v27 = vpop.f32.mrf.mxu1 }
  0xf8   :  { %v493_v26 = vpop.f32.mrf.mxu0  ;;  %v689_v19 = vmax.f32 %v545_v10, 0.0  ;;  %v686_v20 = vmax.f32 %v534_v13, 0.0  ;;  %v606_v41 = vadd.f32 %v2879_v43, %v605_v27 }
  0xf9   :  { %v726_v28 = vpack.c.bf16 %v673_v24, %v672_v23  ;;  %v494_v33 = vadd.f32 %v2879_v43, %v493_v26  ;;  %v678_v46 = vmax.f32 %v502_v35, 0.0  ;;  %v687_v23 = vmax.f32 %v537_v15, 0.0 }
  0xfa   :  { %v2433_v30 = vpop.f32.mrf.mxu0  ;;  %v734_v24 = vpack.c.bf16 %v689_v19, %v688_v18  ;;  %v553_v26 = vadd.f32 %v2923_v32, %v2879_v43  ;;  %v569_v32 = vadd.f32 %v2938_v52, %v2879_v43  ;;  %v593_v52 = vadd.f32 %v2879_v43, %v592_v3 }
  0xfb   :  { %v505_v34 = vadd.f32 %v2433_v30, %v2879_v43  ;;  %2506 = vmatprep.mubr.bf16.mxu1 %v726_v28  ;;  %v676_v44 = vmax.f32 %v494_v33, 0.0  ;;  %v733_v25 = vpack.c.bf16 %v687_v23, %v686_v20  ;;  %v2461_v28 = vpop.f32.mrf.mxu1  ;;  %v693_v30 = vmax.f32 %v561_v2, 0.0 }
  0xfc   :  { %v496_v36 = vpop.f32.mrf.mxu0  ;;  %2507 = vmatmul.mubr.bf16.gmra.mxu1 %v727_v29  ;;  %v692_v29 = vmax.f32 %v558_v37, 0.0  ;;  %v690_v33 = vmax.f32 %v550_v12, 0.0  ;;  %v704_v3 = vmax.f32 %v606_v41, 0.0  ;;  %v706_v19 = vmax.f32 %v614_v31, 0.0 }
  0xfd   :  { %v497_v38 = vadd.f32 %v2879_v43, %v496_v36  ;;  %v679_v39 = vmax.f32 %v505_v34, 0.0  ;;  %v691_v34 = vmax.f32 %v553_v26, 0.0  ;;  %v608_v35 = vpop.f32.mrf.mxu1 }
  0xfe   :  { %v2436_v40 = vpop.f32.mrf.mxu0  ;;  %v736_v36 = vpack.c.bf16 %v693_v30, %v692_v29 }
  0xff   :  { %v677_v45 = vmax.f32 %v497_v38, 0.0  ;;  %v729_v53 = vpack.c.bf16 %v679_v39, %v678_v46  ;;  %v518_v59 = vadd.f32 %v2436_v40, %v2879_v43  ;;  %v735_v38 = vpack.c.bf16 %v691_v34, %v690_v33  ;;  %v2464_v39 = vpop.f32.mrf.mxu1  ;;  %v2680_v40 = vld [vmem:[%s3267_s5] sm:$0xff]  }
 0x100   :  { %v509_v48 = vpop.f32.mrf.mxu0  ;;  %v695_v46 = vmax.f32 %v569_v32, 0.0  ;;  %2564 = vmatprep.subr.bf16.mxu0 %v2680_v40  ;;  %v3032_v32 = vld [vmem:[%s3268_s4] ss:$0 sm:$0xff] }
 0x101   :  { %v728_v49 = vpack.c.bf16 %v677_v45, %v676_v44  ;;  %v510_v57 = vadd.f32 %v2879_v43, %v509_v48  ;;  %v682_v5 = vmax.f32 %v518_v59, 0.0  ;;  %v696_v44 = vmax.f32 %v574_v47, 0.0  ;;  %v621_v48 = vpop.f32.mrf.mxu1  ;;  %2565 = vmatpush3.bf16.msra.mxu0 %v2680_v40 }
 0x102   :  { %v2437_v54 = vpop.f32.mrf.mxu0  ;;  %v697_v45 = vmax.f32 %v577_v56, 0.0  ;;  %v699_v59 = vmax.f32 %v585_v51, 0.0  ;;  %v622_v9 = vadd.f32 %v2879_v43, %v621_v48 }
 0x103   :  { %v521_v58 = vadd.f32 %v2437_v54, %v2879_v43  ;;  %2510 = vmatprep.mubr.bf16.mxu1 %v728_v49  ;;  %v680_v17 = vmax.f32 %v510_v57, 0.0  ;;  %v737_v49 = vpack.c.bf16 %v695_v46, %v694_v1  ;;  %v700_v54 = vmax.f32 %v590_v42, 0.0 }
 0x104   :  { %v512_v60 = vpop.f32.mrf.mxu0  ;;  %2511 = vmatmul.mubr.bf16.gmra.mxu1 %v729_v53  ;;  %v738_v21 = vpack.c.bf16 %v697_v45, %v696_v44  ;;  %v2465_v53 = vpop.f32.mrf.mxu1  ;;  %v701_v57 = vmax.f32 %v593_v52, 0.0  ;;  %v708_v15 = vmax.f32 %v622_v9, 0.0 }
 0x105   :  { %v513_v63 = vadd.f32 %v2879_v43, %v512_v60  ;;  %v683_v0 = vmax.f32 %v521_v58, 0.0  ;;  %v698_v58 = vmax.f32 %v582_v50, 0.0  ;;  %v633_v16 = vadd.f32 %v2465_v53, %v2879_v43 }
 0x106   :  { %v624_v60 = vpop.f32.mrf.mxu1  ;;  %v740_v62 = vpack.c.bf16 %v701_v57, %v700_v54 }
 0x107   :  { %v681_v4 = vmax.f32 %v513_v63, 0.0  ;;  %v731_v14 = vpack.c.bf16 %v683_v0, %v682_v5  ;;  %v609_v63 = vadd.f32 %v2879_v43, %v608_v35  ;;  %v739_v7 = vpack.c.bf16 %v699_v59, %v698_v58 }
 0x108   :  { %v2468_v0 = vpop.f32.mrf.mxu1  ;;  %v703_v5 = vmax.f32 %v601_v11, 0.0  ;;  %v625_v10 = vadd.f32 %v2879_v43, %v624_v60  ;;  %v711_v29 = vmax.f32 %v633_v16, 0.0 }
 0x109   :  { %v730_v6 = vpack.c.bf16 %v681_v4, %v680_v17  ;;  %v705_v17 = vmax.f32 %v609_v63, 0.0  ;;  %v702_v4 = vmax.f32 %v598_v61, 0.0  ;;  %v646_v34 = vadd.f32 %v2468_v0, %v2879_v43 }
 0x10a   :  { %v709_v18 = vmax.f32 %v625_v10, 0.0 }
 0x10b   :  { %2514 = vmatprep.mubr.bf16.mxu1 %v730_v6  ;;  %v637_v6 = vpop.f32.mrf.mxu1  ;;  %v741_v13 = vpack.c.bf16 %v703_v5, %v702_v4 }
 0x10c   :  { %2515 = vmatmul.mubr.bf16.gmra.mxu1 %v731_v14  ;;  %v617_v14 = vadd.f32 %v2461_v28, %v2879_v43  ;;  %v744_v27 = vpack.c.bf16 %v709_v18, %v708_v15 }
 0x10d   :  { %2518 = vmatprep.mubr.bf16.mxu1 %v732_v8  ;;  %v742_v8 = vpack.c.bf16 %v705_v17, %v704_v3  ;;  %v2469_v55 = vpop.f32.mrf.mxu1 }
 0x10e   :  { %v707_v20 = vmax.f32 %v617_v14, 0.0  ;;  %v649_v35 = vadd.f32 %v2469_v55, %v2879_v43 }
 0x10f   :  { %v640_v23 = vpop.f32.mrf.mxu1 }
 0x110   :  { %v641_v37 = vadd.f32 %v2879_v43, %v640_v23  ;;  %v743_v2 = vpack.c.bf16 %v707_v20, %v706_v19  ;;  %v715_v47 = vmax.f32 %v649_v35, 0.0 }
 0x112   :  { %v713_v26 = vmax.f32 %v641_v37, 0.0 }
 0x114   :  { %2519 = vmatmul.mubr.bf16.gmra.mxu1 %v733_v25  ;;  %v630_v25 = vadd.f32 %v2464_v39, %v2879_v43 }
 0x115   :  { %2522 = vmatprep.mubr.bf16.mxu1 %v734_v24  ;;  %v638_v24 = vadd.f32 %v2879_v43, %v637_v6 }
 0x116   :  { %v710_v28 = vmax.f32 %v630_v25, 0.0 }
 0x117   :  { %v712_v12 = vmax.f32 %v638_v24, 0.0 }
 0x118   :  { %v745_v33 = vpack.c.bf16 %v711_v29, %v710_v28 }
 0x119   :  { %v746_v30 = vpack.c.bf16 %v713_v26, %v712_v12 }
 0x11c   :  { %2523 = vmatmul.mubr.bf16.gmra.mxu1 %v735_v38 }
 0x11d   :  { %2526 = vmatprep.mubr.bf16.mxu1 %v736_v36  ;;  %v714_v36 = vmax.f32 %v646_v34, 0.0 }
 0x11f   :  { %v747_v56 = vpack.c.bf16 %v715_v47, %v714_v36 }
 0x124   :  { %2527 = vmatmul.mubr.bf16.gmra.mxu1 %v737_v49 }
 0x125   :  { %2530 = vmatprep.mubr.bf16.mxu1 %v738_v21 }
 0x12c   :  { %2531 = vmatmul.mubr.bf16.gmra.mxu1 %v739_v7 }
 0x12d   :  { %2534 = vmatprep.mubr.bf16.mxu1 %v740_v62 }
 0x134   :  { %2535 = vmatmul.mubr.bf16.gmra.mxu1 %v741_v13 }
 0x135   :  { %2538 = vmatprep.mubr.bf16.mxu1 %v742_v8 }
 0x13c   :  { %2539 = vmatmul.mubr.bf16.gmra.mxu1 %v743_v2 }
 0x13d   :  { %2542 = vmatprep.mubr.bf16.mxu1 %v744_v27 }
 0x144   :  { %2543 = vmatmul.mubr.bf16.gmra.mxu1 %v745_v33 }
 0x145   :  { %2546 = vmatprep.mubr.bf16.mxu1 %v746_v30 }
 0x14c   :  { %2547 = vmatmul.mubr.bf16.gmra.mxu1 %v747_v56 }
 0x194   :  { %v2488_v38 = vpop.f32.mrf.mxu1 }
 0x195   :  { %v862_v43 = vadd.f32 %v2488_v38, %v3032_v32 }
 0x196   :  { %v853_v22 = vpop.f32.mrf.mxu1 }
 0x197   :  { %v854_v40 = vadd.f32 %v3032_v32, %v853_v22  ;;  %v1110_v52 = vmax.f32 %v862_v43, 0.0 }
 0x198   :  { %v2489_v39 = vpop.f32.mrf.mxu1 }
 0x199   :  { %v865_v44 = vadd.f32 %v2489_v39, %v3032_v32  ;;  %v1108_v21 = vmax.f32 %v854_v40, 0.0 }
 0x19a   :  { %v856_v45 = vpop.f32.mrf.mxu1 }
 0x19b   :  { %v857_v1 = vadd.f32 %v3032_v32, %v856_v45  ;;  %v1111_v46 = vmax.f32 %v865_v44, 0.0 }
 0x19c   :  { %v2492_v48 = vpop.f32.mrf.mxu1 }
 0x19d   :  { %v1109_v42 = vmax.f32 %v857_v1, 0.0  ;;  %v1173_v51 = vpack.c.bf16 %v1111_v46, %v1110_v52  ;;  %v878_v58 = vadd.f32 %v2492_v48, %v3032_v32 }
 0x19e   :  { %v869_v49 = vpop.f32.mrf.mxu1 }
 0x19f   :  { %v1172_v50 = vpack.c.bf16 %v1109_v42, %v1108_v21  ;;  %v870_v54 = vadd.f32 %v3032_v32, %v869_v49  ;;  %v1114_v61 = vmax.f32 %v878_v58, 0.0 }
 0x1a0   :  { %v2493_v53 = vpop.f32.mrf.mxu1 }
 0x1a1   :  { %v881_v57 = vadd.f32 %v2493_v53, %v3032_v32  ;;  %2566 = vmatprep.mubr.bf16.mxu0 %v1172_v50  ;;  %v1112_v63 = vmax.f32 %v870_v54, 0.0 }
 0x1a2   :  { %v872_v59 = vpop.f32.mrf.mxu1  ;;  %2567 = vmatmul.mubr.bf16.vlgmr.msra.gmra.mxu0 %v1173_v51 }
 0x1a3   :  { %v873_v60 = vadd.f32 %v3032_v32, %v872_v59  ;;  %v1115_v62 = vmax.f32 %v881_v57, 0.0 }
 0x1a4   :  { %v2496_v41 = vpop.f32.mrf.mxu1 }
 0x1a5   :  { %v1113_v7 = vmax.f32 %v873_v60, 0.0  ;;  %v1175_v3 = vpack.c.bf16 %v1115_v62, %v1114_v61  ;;  %v894_v6 = vadd.f32 %v2496_v41, %v3032_v32 }
 0x1a6   :  { %v885_v11 = vpop.f32.mrf.mxu1 }
 0x1a7   :  { %v1174_v0 = vpack.c.bf16 %v1113_v7, %v1112_v63  ;;  %v886_v4 = vadd.f32 %v3032_v32, %v885_v11  ;;  %v1118_v55 = vmax.f32 %v894_v6, 0.0 }
 0x1a8   :  { %v2497_v17 = vpop.f32.mrf.mxu1 }
 0x1a9   :  { %v897_v5 = vadd.f32 %v2497_v17, %v3032_v32  ;;  %2570 = vmatprep.mubr.bf16.mxu0 %v1174_v0  ;;  %v1116_v31 = vmax.f32 %v886_v4, 0.0 }
 0x1aa   :  { %v888_v8 = vpop.f32.mrf.mxu1  ;;  %2571 = vmatmul.mubr.bf16.gmra.mxu0 %v1175_v3 }
 0x1ab   :  { %v889_v9 = vadd.f32 %v3032_v32, %v888_v8  ;;  %v1119_v10 = vmax.f32 %v897_v5, 0.0 }
 0x1ac   :  { %v2500_v13 = vpop.f32.mrf.mxu1 }
 0x1ad   :  { %v1117_v14 = vmax.f32 %v889_v9, 0.0  ;;  %v1177_v19 = vpack.c.bf16 %v1119_v10, %v1118_v55  ;;  %v910_v24 = vadd.f32 %v2500_v13, %v3032_v32 }
 0x1ae   :  { %v901_v15 = vpop.f32.mrf.mxu1 }
 0x1af   :  { %v1176_v18 = vpack.c.bf16 %v1117_v14, %v1116_v31  ;;  %v902_v23 = vadd.f32 %v3032_v32, %v901_v15  ;;  %v1122_v28 = vmax.f32 %v910_v24, 0.0 }
 0x1b0   :  { %v2501_v20 = vpop.f32.mrf.mxu1 }
 0x1b1   :  { %v913_v27 = vadd.f32 %v2501_v20, %v3032_v32  ;;  %2574 = vmatprep.mubr.bf16.mxu0 %v1176_v18  ;;  %v1120_v12 = vmax.f32 %v902_v23, 0.0 }
 0x1b2   :  { %v904_v37 = vpop.f32.mrf.mxu1  ;;  %2575 = vmatmul.mubr.bf16.gmra.mxu0 %v1177_v19 }
 0x1b3   :  { %v905_v2 = vadd.f32 %v3032_v32, %v904_v37  ;;  %v1123_v25 = vmax.f32 %v913_v27, 0.0 }
 0x1b4   :  { %v2504_v16 = vpop.f32.mrf.mxu1 }
 0x1b5   :  { %v1121_v26 = vmax.f32 %v905_v2, 0.0  ;;  %v1179_v33 = vpack.c.bf16 %v1123_v25, %v1122_v28  ;;  %v926_v47 = vadd.f32 %v2504_v16, %v3032_v32 }
 0x1b6   :  { %v917_v29 = vpop.f32.mrf.mxu1 }
 0x1b7   :  { %v1178_v30 = vpack.c.bf16 %v1121_v26, %v1120_v12  ;;  %v918_v35 = vadd.f32 %v3032_v32, %v917_v29  ;;  %v1126_v43 = vmax.f32 %v926_v47, 0.0 }
 0x1b8   :  { %v2505_v34 = vpop.f32.mrf.mxu1 }
 0x1b9   :  { %v929_v36 = vadd.f32 %v2505_v34, %v3032_v32  ;;  %2578 = vmatprep.mubr.bf16.mxu0 %v1178_v30  ;;  %v1124_v40 = vmax.f32 %v918_v35, 0.0 }
 0x1ba   :  { %v920_v56 = vpop.f32.mrf.mxu1  ;;  %2579 = vmatmul.mubr.bf16.gmra.mxu0 %v1179_v33 }
 0x1bb   :  { %v921_v38 = vadd.f32 %v3032_v32, %v920_v56  ;;  %v1127_v22 = vmax.f32 %v929_v36, 0.0 }
 0x1bc   :  { %v2508_v39 = vpop.f32.mrf.mxu1 }
 0x1bd   :  { %v1125_v44 = vmax.f32 %v921_v38, 0.0  ;;  %v1181_v46 = vpack.c.bf16 %v1127_v22, %v1126_v43  ;;  %v942_v52 = vadd.f32 %v2508_v39, %v3032_v32 }
 0x1be   :  { %v933_v45 = vpop.f32.mrf.mxu1 }
 0x1bf   :  { %v1180_v1 = vpack.c.bf16 %v1125_v44, %v1124_v40  ;;  %v934_v21 = vadd.f32 %v3032_v32, %v933_v45  ;;  %v1130_v58 = vmax.f32 %v942_v52, 0.0 }
 0x1c0   :  { %v2509_v48 = vpop.f32.mrf.mxu1 }
 0x1c1   :  { %v945_v42 = vadd.f32 %v2509_v48, %v3032_v32  ;;  %2582 = vmatprep.mubr.bf16.mxu0 %v1180_v1  ;;  %v1128_v54 = vmax.f32 %v934_v21, 0.0 }
 0x1c2   :  { %v936_v49 = vpop.f32.mrf.mxu1  ;;  %2583 = vmatmul.mubr.bf16.gmra.mxu0 %v1181_v46 }
 0x1c3   :  { %v937_v50 = vadd.f32 %v3032_v32, %v936_v49  ;;  %v1131_v51 = vmax.f32 %v945_v42, 0.0 }
 0x1c4   :  { %v2512_v53 = vpop.f32.mrf.mxu1 }
 0x1c5   :  { %v1129_v57 = vmax.f32 %v937_v50, 0.0  ;;  %v1183_v62 = vpack.c.bf16 %v1131_v51, %v1130_v58  ;;  %v958_v61 = vadd.f32 %v2512_v53, %v3032_v32 }
 0x1c6   :  { %v949_v59 = vpop.f32.mrf.mxu1 }
 0x1c7   :  { %v1182_v60 = vpack.c.bf16 %v1129_v57, %v1128_v54  ;;  %v950_v63 = vadd.f32 %v3032_v32, %v949_v59  ;;  %v1134_v6 = vmax.f32 %v958_v61, 0.0 }
 0x1c8   :  { %v2513_v41 = vpop.f32.mrf.mxu1 }
 0x1c9   :  { %v961_v7 = vadd.f32 %v2513_v41, %v3032_v32  ;;  %2586 = vmatprep.mubr.bf16.mxu0 %v1182_v60  ;;  %v1132_v4 = vmax.f32 %v950_v63, 0.0 }
 0x1ca   :  { %v952_v11 = vpop.f32.mrf.mxu1  ;;  %2587 = vmatmul.mubr.bf16.gmra.mxu0 %v1183_v62 }
 0x1cb   :  { %v953_v0 = vadd.f32 %v3032_v32, %v952_v11  ;;  %v1135_v3 = vmax.f32 %v961_v7, 0.0 }
 0x1cc   :  { %v2516_v17 = vpop.f32.mrf.mxu1 }
 0x1cd   :  { %v1133_v5 = vmax.f32 %v953_v0, 0.0  ;;  %v1185_v10 = vpack.c.bf16 %v1135_v3, %v1134_v6  ;;  %v974_v55 = vadd.f32 %v2516_v17, %v3032_v32 }
 0x1ce   :  { %v965_v8 = vpop.f32.mrf.mxu1 }
 0x1cf   :  { %v1184_v9 = vpack.c.bf16 %v1133_v5, %v1132_v4  ;;  %v966_v31 = vadd.f32 %v3032_v32, %v965_v8  ;;  %v1138_v24 = vmax.f32 %v974_v55, 0.0 }
 0x1d0   :  { %v2517_v13 = vpop.f32.mrf.mxu1 }
 0x1d1   :  { %v977_v14 = vadd.f32 %v2517_v13, %v3032_v32  ;;  %2590 = vmatprep.mubr.bf16.mxu0 %v1184_v9  ;;  %v1136_v23 = vmax.f32 %v966_v31, 0.0 }
 0x1d2   :  { %v968_v15 = vpop.f32.mrf.mxu1  ;;  %2591 = vmatmul.mubr.bf16.gmra.mxu0 %v1185_v10 }
 0x1d3   :  { %v969_v18 = vadd.f32 %v3032_v32, %v968_v15  ;;  %v1139_v19 = vmax.f32 %v977_v14, 0.0 }
 0x1d4   :  { %v2520_v20 = vpop.f32.mrf.mxu1 }
 0x1d5   :  { %v1137_v27 = vmax.f32 %v969_v18, 0.0  ;;  %v1187_v25 = vpack.c.bf16 %v1139_v19, %v1138_v24  ;;  %v990_v28 = vadd.f32 %v2520_v20, %v3032_v32 }
 0x1d6   :  { %v981_v37 = vpop.f32.mrf.mxu1 }
 0x1d7   :  { %v1186_v2 = vpack.c.bf16 %v1137_v27, %v1136_v23  ;;  %v982_v12 = vadd.f32 %v3032_v32, %v981_v37  ;;  %v1142_v47 = vmax.f32 %v990_v28, 0.0 }
 0x1d8   :  { %v2521_v16 = vpop.f32.mrf.mxu1 }
 0x1d9   :  { %v993_v26 = vadd.f32 %v2521_v16, %v3032_v32  ;;  %2594 = vmatprep.mubr.bf16.mxu0 %v1186_v2  ;;  %v1140_v35 = vmax.f32 %v982_v12, 0.0 }
 0x1da   :  { %v984_v29 = vpop.f32.mrf.mxu1  ;;  %2595 = vmatmul.mubr.bf16.gmra.mxu0 %v1187_v25 }
 0x1db   :  { %v985_v30 = vadd.f32 %v3032_v32, %v984_v29  ;;  %v1143_v33 = vmax.f32 %v993_v26, 0.0 }
 0x1dc   :  { %v2524_v34 = vpop.f32.mrf.mxu1 }
 0x1dd   :  { %v1141_v36 = vmax.f32 %v985_v30, 0.0  ;;  %v1189_v22 = vpack.c.bf16 %v1143_v33, %v1142_v47  ;;  %v1006_v43 = vadd.f32 %v2524_v34, %v3032_v32 }
 0x1de   :  { %v997_v56 = vpop.f32.mrf.mxu1 }
 0x1df   :  { %v1188_v38 = vpack.c.bf16 %v1141_v36, %v1140_v35  ;;  %v998_v40 = vadd.f32 %v3032_v32, %v997_v56  ;;  %v1146_v52 = vmax.f32 %v1006_v43, 0.0 }
 0x1e0   :  { %v2525_v39 = vpop.f32.mrf.mxu1 }
 0x1e1   :  { %v1009_v44 = vadd.f32 %v2525_v39, %v3032_v32  ;;  %2598 = vmatprep.mubr.bf16.mxu0 %v1188_v38  ;;  %v1144_v21 = vmax.f32 %v998_v40, 0.0 }
 0x1e2   :  { %v1000_v45 = vpop.f32.mrf.mxu1  ;;  %2599 = vmatmul.mubr.bf16.gmra.mxu0 %v1189_v22 }
 0x1e3   :  { %v1001_v1 = vadd.f32 %v3032_v32, %v1000_v45  ;;  %v1147_v46 = vmax.f32 %v1009_v44, 0.0 }
 0x1e4   :  { %v2528_v48 = vpop.f32.mrf.mxu1 }
 0x1e5   :  { %v1145_v42 = vmax.f32 %v1001_v1, 0.0  ;;  %v1191_v51 = vpack.c.bf16 %v1147_v46, %v1146_v52  ;;  %v1022_v58 = vadd.f32 %v2528_v48, %v3032_v32 }
 0x1e6   :  { %v1013_v49 = vpop.f32.mrf.mxu1 }
 0x1e7   :  { %v1190_v50 = vpack.c.bf16 %v1145_v42, %v1144_v21  ;;  %v1014_v54 = vadd.f32 %v3032_v32, %v1013_v49  ;;  %v1150_v61 = vmax.f32 %v1022_v58, 0.0 }
 0x1e8   :  { %v2529_v53 = vpop.f32.mrf.mxu1 }
 0x1e9   :  { %v1025_v57 = vadd.f32 %v2529_v53, %v3032_v32  ;;  %2602 = vmatprep.mubr.bf16.mxu0 %v1190_v50  ;;  %v1148_v63 = vmax.f32 %v1014_v54, 0.0 }
 0x1ea   :  { %v1016_v59 = vpop.f32.mrf.mxu1  ;;  %2603 = vmatmul.mubr.bf16.gmra.mxu0 %v1191_v51 }
 0x1eb   :  { %v1017_v60 = vadd.f32 %v3032_v32, %v1016_v59  ;;  %v1151_v62 = vmax.f32 %v1025_v57, 0.0 }
 0x1ec   :  { %v2532_v41 = vpop.f32.mrf.mxu1 }
 0x1ed   :  { %v1149_v7 = vmax.f32 %v1017_v60, 0.0  ;;  %v1193_v3 = vpack.c.bf16 %v1151_v62, %v1150_v61  ;;  %v1038_v6 = vadd.f32 %v2532_v41, %v3032_v32 }
 0x1ee   :  { %v1029_v11 = vpop.f32.mrf.mxu1 }
 0x1ef   :  { %v1192_v0 = vpack.c.bf16 %v1149_v7, %v1148_v63  ;;  %v1030_v4 = vadd.f32 %v3032_v32, %v1029_v11  ;;  %v1154_v55 = vmax.f32 %v1038_v6, 0.0 }
 0x1f0   :  { %v2533_v17 = vpop.f32.mrf.mxu1 }
 0x1f1   :  { %v1041_v5 = vadd.f32 %v2533_v17, %v3032_v32  ;;  %2606 = vmatprep.mubr.bf16.mxu0 %v1192_v0  ;;  %v1152_v31 = vmax.f32 %v1030_v4, 0.0 }
 0x1f2   :  { %v1032_v8 = vpop.f32.mrf.mxu1  ;;  %2607 = vmatmul.mubr.bf16.gmra.mxu0 %v1193_v3 }
 0x1f3   :  { %v1033_v9 = vadd.f32 %v3032_v32, %v1032_v8  ;;  %v1155_v10 = vmax.f32 %v1041_v5, 0.0 }
 0x1f4   :  { %v2536_v13 = vpop.f32.mrf.mxu1 }
 0x1f5   :  { %v1153_v14 = vmax.f32 %v1033_v9, 0.0  ;;  %v1195_v19 = vpack.c.bf16 %v1155_v10, %v1154_v55  ;;  %v1054_v24 = vadd.f32 %v2536_v13, %v3032_v32  ;;  %v3101_v10 = vld [vmem:[%s3269_s6] ss:$0 sm:$0xff] }
 0x1f6   :  { %v1045_v15 = vpop.f32.mrf.mxu1 }
 0x1f7   :  { %v1194_v18 = vpack.c.bf16 %v1153_v14, %v1152_v31  ;;  %v1046_v23 = vadd.f32 %v3032_v32, %v1045_v15  ;;  %v1158_v28 = vmax.f32 %v1054_v24, 0.0 }
 0x1f8   :  { %v2537_v20 = vpop.f32.mrf.mxu1 }
 0x1f9   :  { %v1057_v27 = vadd.f32 %v2537_v20, %v3032_v32  ;;  %2610 = vmatprep.mubr.bf16.mxu0 %v1194_v18  ;;  %v1156_v12 = vmax.f32 %v1046_v23, 0.0 }
 0x1fa   :  { %v1048_v37 = vpop.f32.mrf.mxu1  ;;  %2611 = vmatmul.mubr.bf16.gmra.mxu0 %v1195_v19 }
 0x1fb   :  { %v1049_v2 = vadd.f32 %v3032_v32, %v1048_v37  ;;  %v1159_v25 = vmax.f32 %v1057_v27, 0.0 }
 0x1fc   :  { %v2540_v16 = vpop.f32.mrf.mxu1 }
 0x1fd   :  { %v1157_v26 = vmax.f32 %v1049_v2, 0.0  ;;  %v1197_v33 = vpack.c.bf16 %v1159_v25, %v1158_v28  ;;  %v1070_v47 = vadd.f32 %v2540_v16, %v3032_v32 }
 0x1fe   :  { %v1061_v29 = vpop.f32.mrf.mxu1 }
 0x1ff   :  { %v1196_v30 = vpack.c.bf16 %v1157_v26, %v1156_v12  ;;  %v1062_v35 = vadd.f32 %v3032_v32, %v1061_v29  ;;  %v1162_v43 = vmax.f32 %v1070_v47, 0.0 }
 0x200   :  { %v2541_v34 = vpop.f32.mrf.mxu1 }
 0x201   :  { %v1073_v36 = vadd.f32 %v2541_v34, %v3032_v32  ;;  %2614 = vmatprep.mubr.bf16.mxu0 %v1196_v30  ;;  %v1160_v40 = vmax.f32 %v1062_v35, 0.0 }
 0x202   :  { %v1064_v56 = vpop.f32.mrf.mxu1  ;;  %2615 = vmatmul.mubr.bf16.gmra.mxu0 %v1197_v33 }
 0x203   :  { %v1065_v38 = vadd.f32 %v3032_v32, %v1064_v56  ;;  %v1163_v22 = vmax.f32 %v1073_v36, 0.0 }
 0x204   :  { %v2544_v39 = vpop.f32.mrf.mxu1 }
 0x205   :  { %v1161_v44 = vmax.f32 %v1065_v38, 0.0  ;;  %v1199_v46 = vpack.c.bf16 %v1163_v22, %v1162_v43  ;;  %v1086_v52 = vadd.f32 %v2544_v39, %v3032_v32 }
 0x206   :  { %v1077_v45 = vpop.f32.mrf.mxu1 }
 0x207   :  { %v1198_v1 = vpack.c.bf16 %v1161_v44, %v1160_v40  ;;  %v1078_v21 = vadd.f32 %v3032_v32, %v1077_v45  ;;  %v1166_v58 = vmax.f32 %v1086_v52, 0.0 }
 0x208   :  { %v2545_v48 = vpop.f32.mrf.mxu1 }
 0x209   :  { %v1089_v42 = vadd.f32 %v2545_v48, %v3032_v32  ;;  %2618 = vmatprep.mubr.bf16.mxu0 %v1198_v1  ;;  %v1164_v54 = vmax.f32 %v1078_v21, 0.0 }
 0x20a   :  { %v1080_v49 = vpop.f32.mrf.mxu1  ;;  %2619 = vmatmul.mubr.bf16.gmra.mxu0 %v1199_v46 }
 0x20b   :  { %v1081_v50 = vadd.f32 %v3032_v32, %v1080_v49  ;;  %v1167_v51 = vmax.f32 %v1089_v42, 0.0 }
 0x20c   :  { %v2548_v53 = vpop.f32.mrf.mxu1 }
 0x20d   :  { %v1165_v57 = vmax.f32 %v1081_v50, 0.0  ;;  %v1201_v62 = vpack.c.bf16 %v1167_v51, %v1166_v58  ;;  %v1102_v61 = vadd.f32 %v2548_v53, %v3032_v32 }
 0x20e   :  { %v1093_v59 = vpop.f32.mrf.mxu1 }
 0x20f   :  { %v1200_v60 = vpack.c.bf16 %v1165_v57, %v1164_v54  ;;  %v1094_v63 = vadd.f32 %v3032_v32, %v1093_v59  ;;  %v1170_v5 = vmax.f32 %v1102_v61, 0.0 }
 0x210   :  { %v2549_v41 = vpop.f32.mrf.mxu1 }
 0x211   :  { %v1105_v7 = vadd.f32 %v2549_v41, %v3032_v32  ;;  %2622 = vmatprep.mubr.bf16.mxu0 %v1200_v60  ;;  %v1168_v17 = vmax.f32 %v1094_v63, 0.0 }
 0x212   :  { %v1096_v11 = vpop.f32.mrf.mxu1  ;;  %2623 = vmatmul.mubr.bf16.gmra.mxu0 %v1201_v62 }
 0x213   :  { %v1097_v0 = vadd.f32 %v3032_v32, %v1096_v11  ;;  %v1171_v3 = vmax.f32 %v1105_v7, 0.0 }
 0x215   :  { %v1169_v4 = vmax.f32 %v1097_v0, 0.0  ;;  %v1203_v8 = vpack.c.bf16 %v1171_v3, %v1170_v5 }
 0x217   :  { %v1202_v6 = vpack.c.bf16 %v1169_v4, %v1168_v17 }
 0x219   :  { %2626 = vmatprep.mubr.bf16.mxu0 %v1202_v6 }
 0x21a   :  { %2627 = vmatmul.mubr.bf16.gmra.mxu0 %v1203_v8 }
 0x262   :  { %v2568_v9 = vpop.f32.mrf.mxu0 }
 0x263   :  { %v1318_v14 = vadd.f32 %v2568_v9, %v3101_v10 }
 0x264   :  { %v1309_v13 = vpop.f32.mrf.mxu0 }
 0x265   :  { %v1310_v15 = vadd.f32 %v3101_v10, %v1309_v13 }
 0x266   :  { %v2569_v31 = vpop.f32.mrf.mxu0 }
 0x267   :  { %v1321_v32 = vadd.f32 %v2569_v31, %v3101_v10 }
 0x268   :  { %v1312_v55 = vpop.f32.mrf.mxu0 }
 0x269   :  { %v2108_v18 = vpack.c.bf16 %v1321_v32, %v1318_v14  ;;  %v1313_v19 = vadd.f32 %v3101_v10, %v1312_v55 }
 0x26a   :  { %v2572_v20 = vpop.f32.mrf.mxu0 }
 0x26b   :  { %2260 = vst [vmem:[%s3270_s7 + $0x8] sm:$0xff] %v2108_v18   ;;  %v2103_v23 = vpack.c.bf16 %v1313_v19, %v1310_v15  ;;  %v1334_v37 = vadd.f32 %v2572_v20, %v3101_v10 }
 0x26c   :  { %v1325_v27 = vpop.f32.mrf.mxu0 }
 0x26d   :  { %2104 = vst [vmem:[%s3270_s7] sm:$0xff] %v2103_v23   ;;  %v1326_v16 = vadd.f32 %v3101_v10, %v1325_v27 }
 0x26e   :  { %v2573_v24 = vpop.f32.mrf.mxu0 }
 0x26f   :  { %v1337_v2 = vadd.f32 %v2573_v24, %v3101_v10 }
 0x270   :  { %v1328_v25 = vpop.f32.mrf.mxu0 }
 0x271   :  { %v2118_v12 = vpack.c.bf16 %v1337_v2, %v1334_v37  ;;  %v1329_v26 = vadd.f32 %v3101_v10, %v1328_v25 }
 0x272   :  { %v2576_v28 = vpop.f32.mrf.mxu0 }
 0x273   :  { %2262 = vst [vmem:[%s3270_s7 + $0x18] sm:$0xff] %v2118_v12   ;;  %v2113_v29 = vpack.c.bf16 %v1329_v26, %v1326_v16  ;;  %v1350_v34 = vadd.f32 %v2576_v28, %v3101_v10 }
 0x274   :  { %v1341_v30 = vpop.f32.mrf.mxu0 }
 0x275   :  { %2261 = vst [vmem:[%s3270_s7 + $0x10] sm:$0xff] %v2113_v29   ;;  %v1342_v47 = vadd.f32 %v3101_v10, %v1341_v30 }
 0x276   :  { %v2577_v33 = vpop.f32.mrf.mxu0 }
 0x277   :  { %v1353_v35 = vadd.f32 %v2577_v33, %v3101_v10 }
 0x278   :  { %v1344_v36 = vpop.f32.mrf.mxu0 }
 0x279   :  { %v2128_v56 = vpack.c.bf16 %v1353_v35, %v1350_v34  ;;  %v1345_v38 = vadd.f32 %v3101_v10, %v1344_v36 }
 0x27a   :  { %v2580_v22 = vpop.f32.mrf.mxu0 }
 0x27b   :  { %2264 = vst [vmem:[%s3270_s7 + $0x28] sm:$0xff] %v2128_v56   ;;  %v2123_v39 = vpack.c.bf16 %v1345_v38, %v1342_v47  ;;  %v1366_v43 = vadd.f32 %v2580_v22, %v3101_v10 }
 0x27c   :  { %v1357_v40 = vpop.f32.mrf.mxu0 }
 0x27d   :  { %2263 = vst [vmem:[%s3270_s7 + $0x20] sm:$0xff] %v2123_v39   ;;  %v1358_v46 = vadd.f32 %v3101_v10, %v1357_v40 }
 0x27e   :  { %v2581_v44 = vpop.f32.mrf.mxu0 }
 0x27f   :  { %v1369_v45 = vadd.f32 %v2581_v44, %v3101_v10 }
 0x280   :  { %v1360_v1 = vpop.f32.mrf.mxu0 }
 0x281   :  { %v2138_v48 = vpack.c.bf16 %v1369_v45, %v1366_v43  ;;  %v1361_v21 = vadd.f32 %v3101_v10, %v1360_v1 }
 0x282   :  { %v2584_v42 = vpop.f32.mrf.mxu0 }
 0x283   :  { %2266 = vst [vmem:[%s3270_s7 + $0x38] sm:$0xff] %v2138_v48   ;;  %v2133_v52 = vpack.c.bf16 %v1361_v21, %v1358_v46  ;;  %v1382_v51 = vadd.f32 %v2584_v42, %v3101_v10 }
 0x284   :  { %v1373_v49 = vpop.f32.mrf.mxu0 }
 0x285   :  { %2265 = vst [vmem:[%s3270_s7 + $0x30] sm:$0xff] %v2133_v52   ;;  %v1374_v57 = vadd.f32 %v3101_v10, %v1373_v49 }
 0x286   :  { %v2585_v50 = vpop.f32.mrf.mxu0 }
 0x287   :  { %v1385_v53 = vadd.f32 %v2585_v50, %v3101_v10 }
 0x288   :  { %v1376_v54 = vpop.f32.mrf.mxu0 }
 0x289   :  { %v2148_v58 = vpack.c.bf16 %v1385_v53, %v1382_v51  ;;  %v1377_v59 = vadd.f32 %v3101_v10, %v1376_v54 }
 0x28a   :  { %v2588_v60 = vpop.f32.mrf.mxu0 }
 0x28b   :  { %2268 = vst [vmem:[%s3270_s7 + $0x48] sm:$0xff] %v2148_v58   ;;  %v2143_v62 = vpack.c.bf16 %v1377_v59, %v1374_v57  ;;  %v1398_v7 = vadd.f32 %v2588_v60, %v3101_v10 }
 0x28c   :  { %v1389_v41 = vpop.f32.mrf.mxu0 }
 0x28d   :  { %2267 = vst [vmem:[%s3270_s7 + $0x40] sm:$0xff] %v2143_v62   ;;  %v1390_v0 = vadd.f32 %v3101_v10, %v1389_v41 }
 0x28e   :  { %v2589_v63 = vpop.f32.mrf.mxu0 }
 0x28f   :  { %v1401_v61 = vadd.f32 %v2589_v63, %v3101_v10 }
 0x290   :  { %v1392_v11 = vpop.f32.mrf.mxu0 }
 0x291   :  { %v2158_v3 = vpack.c.bf16 %v1401_v61, %v1398_v7  ;;  %v1393_v17 = vadd.f32 %v3101_v10, %v1392_v11 }
 0x292   :  { %v2592_v4 = vpop.f32.mrf.mxu0 }
 0x293   :  { %2270 = vst [vmem:[%s3270_s7 + $0x58] sm:$0xff] %v2158_v3   ;;  %v2153_v5 = vpack.c.bf16 %v1393_v17, %v1390_v0  ;;  %v1414_v9 = vadd.f32 %v2592_v4, %v3101_v10 }
 0x294   :  { %v1405_v6 = vpop.f32.mrf.mxu0 }
 0x295   :  { %2269 = vst [vmem:[%s3270_s7 + $0x50] sm:$0xff] %v2153_v5   ;;  %v1406_v14 = vadd.f32 %v3101_v10, %v1405_v6 }
 0x296   :  { %v2593_v8 = vpop.f32.mrf.mxu0 }
 0x297   :  { %v1417_v13 = vadd.f32 %v2593_v8, %v3101_v10 }
 0x298   :  { %v1408_v31 = vpop.f32.mrf.mxu0 }
 0x299   :  { %v2168_v32 = vpack.c.bf16 %v1417_v13, %v1414_v9  ;;  %v1409_v55 = vadd.f32 %v3101_v10, %v1408_v31 }
 0x29a   :  { %v2596_v15 = vpop.f32.mrf.mxu0 }
 0x29b   :  { %2272 = vst [vmem:[%s3270_s7 + $0x68] sm:$0xff] %v2168_v32   ;;  %v2163_v18 = vpack.c.bf16 %v1409_v55, %v1406_v14  ;;  %v1430_v23 = vadd.f32 %v2596_v15, %v3101_v10 }
 0x29c   :  { %v1421_v19 = vpop.f32.mrf.mxu0 }
 0x29d   :  { %2271 = vst [vmem:[%s3270_s7 + $0x60] sm:$0xff] %v2163_v18   ;;  %v1422_v37 = vadd.f32 %v3101_v10, %v1421_v19 }
 0x29e   :  { %v2597_v20 = vpop.f32.mrf.mxu0 }
 0x29f   :  { %v1433_v27 = vadd.f32 %v2597_v20, %v3101_v10 }
 0x2a0   :  { %v1424_v24 = vpop.f32.mrf.mxu0 }
 0x2a1   :  { %v2178_v2 = vpack.c.bf16 %v1433_v27, %v1430_v23  ;;  %v1425_v25 = vadd.f32 %v3101_v10, %v1424_v24 }
 0x2a2   :  { %v2600_v16 = vpop.f32.mrf.mxu0 }
 0x2a3   :  { %2274 = vst [vmem:[%s3270_s7 + $0x78] sm:$0xff] %v2178_v2   ;;  %v2173_v12 = vpack.c.bf16 %v1425_v25, %v1422_v37  ;;  %v1446_v29 = vadd.f32 %v2600_v16, %v3101_v10 }
 0x2a4   :  { %v1437_v26 = vpop.f32.mrf.mxu0 }
 0x2a5   :  { %2273 = vst [vmem:[%s3270_s7 + $0x70] sm:$0xff] %v2173_v12   ;;  %v1438_v34 = vadd.f32 %v3101_v10, %v1437_v26 }
 0x2a6   :  { %v2601_v28 = vpop.f32.mrf.mxu0 }
 0x2a7   :  { %v1449_v30 = vadd.f32 %v2601_v28, %v3101_v10 }
 0x2a8   :  { %v1440_v33 = vpop.f32.mrf.mxu0 }
 0x2a9   :  { %v2188_v35 = vpack.c.bf16 %v1449_v30, %v1446_v29  ;;  %v1441_v36 = vadd.f32 %v3101_v10, %v1440_v33 }
 0x2aa   :  { %v2604_v47 = vpop.f32.mrf.mxu0 }
 0x2ab   :  { %2276 = vst [vmem:[%s3270_s7 + $0x88] sm:$0xff] %v2188_v35   ;;  %v2183_v56 = vpack.c.bf16 %v1441_v36, %v1438_v34  ;;  %v1462_v39 = vadd.f32 %v2604_v47, %v3101_v10 }
 0x2ac   :  { %v1453_v38 = vpop.f32.mrf.mxu0 }
 0x2ad   :  { %2275 = vst [vmem:[%s3270_s7 + $0x80] sm:$0xff] %v2183_v56   ;;  %v1454_v43 = vadd.f32 %v3101_v10, %v1453_v38 }
 0x2ae   :  { %v2605_v22 = vpop.f32.mrf.mxu0 }
 0x2af   :  { %v1465_v40 = vadd.f32 %v2605_v22, %v3101_v10 }
 0x2b0   :  { %v1456_v44 = vpop.f32.mrf.mxu0 }
 0x2b1   :  { %v2198_v45 = vpack.c.bf16 %v1465_v40, %v1462_v39  ;;  %v1457_v1 = vadd.f32 %v3101_v10, %v1456_v44 }
 0x2b2   :  { %v2608_v46 = vpop.f32.mrf.mxu0 }
 0x2b3   :  { %2278 = vst [vmem:[%s3270_s7 + $0x98] sm:$0xff] %v2198_v45   ;;  %v2193_v48 = vpack.c.bf16 %v1457_v1, %v1454_v43  ;;  %v1478_v52 = vadd.f32 %v2608_v46, %v3101_v10 }
 0x2b4   :  { %v1469_v21 = vpop.f32.mrf.mxu0 }
 0x2b5   :  { %2277 = vst [vmem:[%s3270_s7 + $0x90] sm:$0xff] %v2193_v48   ;;  %v1470_v51 = vadd.f32 %v3101_v10, %v1469_v21 }
 0x2b6   :  { %v2609_v42 = vpop.f32.mrf.mxu0 }
 0x2b7   :  { %v1481_v49 = vadd.f32 %v2609_v42, %v3101_v10 }
 0x2b8   :  { %v1472_v50 = vpop.f32.mrf.mxu0 }
 0x2b9   :  { %v2208_v53 = vpack.c.bf16 %v1481_v49, %v1478_v52  ;;  %v1473_v54 = vadd.f32 %v3101_v10, %v1472_v50 }
 0x2ba   :  { %v2612_v57 = vpop.f32.mrf.mxu0 }
 0x2bb   :  { %2280 = vst [vmem:[%s3270_s7 + $0xa8] sm:$0xff] %v2208_v53   ;;  %v2203_v58 = vpack.c.bf16 %v1473_v54, %v1470_v51  ;;  %v1494_v62 = vadd.f32 %v2612_v57, %v3101_v10 }
 0x2bc   :  { %v1485_v59 = vpop.f32.mrf.mxu0 }
 0x2bd   :  { %2279 = vst [vmem:[%s3270_s7 + $0xa0] sm:$0xff] %v2203_v58   ;;  %v1486_v7 = vadd.f32 %v3101_v10, %v1485_v59 }
 0x2be   :  { %v2613_v60 = vpop.f32.mrf.mxu0 }
 0x2bf   :  { %v1497_v41 = vadd.f32 %v2613_v60, %v3101_v10 }
 0x2c0   :  { %v1488_v63 = vpop.f32.mrf.mxu0 }
 0x2c1   :  { %v2218_v61 = vpack.c.bf16 %v1497_v41, %v1494_v62  ;;  %v1489_v11 = vadd.f32 %v3101_v10, %v1488_v63 }
 0x2c2   :  { %v2616_v0 = vpop.f32.mrf.mxu0 }
 0x2c3   :  { %2282 = vst [vmem:[%s3270_s7 + $0xb8] sm:$0xff] %v2218_v61   ;;  %v2213_v3 = vpack.c.bf16 %v1489_v11, %v1486_v7  ;;  %v1510_v5 = vadd.f32 %v2616_v0, %v3101_v10 }
 0x2c4   :  { %v1501_v17 = vpop.f32.mrf.mxu0 }
 0x2c5   :  { %2281 = vst [vmem:[%s3270_s7 + $0xb0] sm:$0xff] %v2213_v3   ;;  %v1502_v9 = vadd.f32 %v3101_v10, %v1501_v17 }
 0x2c6   :  { %v2617_v4 = vpop.f32.mrf.mxu0 }
 0x2c7   :  { %v1513_v6 = vadd.f32 %v2617_v4, %v3101_v10 }
 0x2c8   :  { %v1504_v8 = vpop.f32.mrf.mxu0 }
 0x2c9   :  { %v2228_v13 = vpack.c.bf16 %v1513_v6, %v1510_v5  ;;  %v1505_v31 = vadd.f32 %v3101_v10, %v1504_v8 }
 0x2ca   :  { %v2620_v14 = vpop.f32.mrf.mxu0 }
 0x2cb   :  { %2284 = vst [vmem:[%s3270_s7 + $0xc8] sm:$0xff] %v2228_v13   ;;  %v2223_v32 = vpack.c.bf16 %v1505_v31, %v1502_v9  ;;  %v1526_v18 = vadd.f32 %v2620_v14, %v3101_v10 }
 0x2cc   :  { %v1517_v55 = vpop.f32.mrf.mxu0 }
 0x2cd   :  { %2283 = vst [vmem:[%s3270_s7 + $0xc0] sm:$0xff] %v2223_v32   ;;  %v1518_v23 = vadd.f32 %v3101_v10, %v1517_v55 }
 0x2ce   :  { %v2621_v15 = vpop.f32.mrf.mxu0 }
 0x2cf   :  { %v1529_v19 = vadd.f32 %v2621_v15, %v3101_v10 }
 0x2d0   :  { %v1520_v20 = vpop.f32.mrf.mxu0 }
 0x2d1   :  { %v2238_v27 = vpack.c.bf16 %v1529_v19, %v1526_v18  ;;  %v1521_v24 = vadd.f32 %v3101_v10, %v1520_v20 }
 0x2d2   :  { %v2624_v37 = vpop.f32.mrf.mxu0 }
 0x2d3   :  { %2286 = vst [vmem:[%s3270_s7 + $0xd8] sm:$0xff] %v2238_v27   ;;  %v2233_v2 = vpack.c.bf16 %v1521_v24, %v1518_v23  ;;  %v1542_v12 = vadd.f32 %v2624_v37, %v3101_v10 }
 0x2d4   :  { %v1533_v25 = vpop.f32.mrf.mxu0 }
 0x2d5   :  { %2285 = vst [vmem:[%s3270_s7 + $0xd0] sm:$0xff] %v2233_v2   ;;  %v1534_v29 = vadd.f32 %v3101_v10, %v1533_v25 }
 0x2d6   :  { %v2625_v16 = vpop.f32.mrf.mxu0 }
 0x2d7   :  { %v1545_v26 = vadd.f32 %v2625_v16, %v3101_v10 }
 0x2d8   :  { %v1536_v28 = vpop.f32.mrf.mxu0 }
 0x2d9   :  { %v2248_v30 = vpack.c.bf16 %v1545_v26, %v1542_v12  ;;  %v1537_v33 = vadd.f32 %v3101_v10, %v1536_v28 }
 0x2da   :  { %v2628_v34 = vpop.f32.mrf.mxu0 }
 0x2db   :  { %2288 = vst [vmem:[%s3270_s7 + $0xe8] sm:$0xff] %v2248_v30   ;;  %v2243_v35 = vpack.c.bf16 %v1537_v33, %v1534_v29  ;;  %v1558_v56 = vadd.f32 %v2628_v34, %v3101_v10 }
 0x2dc   :  { %v1549_v36 = vpop.f32.mrf.mxu0 }
 0x2dd   :  { %2287 = vst [vmem:[%s3270_s7 + $0xe0] sm:$0xff] %v2243_v35   ;;  %v1550_v39 = vadd.f32 %v3101_v10, %v1549_v36 }
 0x2de   :  { %v2629_v47 = vpop.f32.mrf.mxu0 }
 0x2df   :  { %v1561_v38 = vadd.f32 %v2629_v47, %v3101_v10 }
 0x2e0   :  { %v1552_v22 = vpop.f32.mrf.mxu0 }
 0x2e1   :  { %v2258_v40 = vpack.c.bf16 %v1561_v38, %v1558_v56  ;;  %v1553_v44 = vadd.f32 %v3101_v10, %v1552_v22 }
 0x2e3   :  { %2290 = vst [vmem:[%s3270_s7 + $0xf8] sm:$0xff] %v2258_v40   ;;  %v2253_v43 = vpack.c.bf16 %v1553_v44, %v1550_v39 }
 0x2e5   :  { %2289 = vst [vmem:[%s3270_s7 + $0xf0] sm:$0xff] %v2253_v43  }

</bundles_post_ra>
